<compile_context>
chip_gen: v6e
topology: v6e:2x2x1
jax: 0.10.0
libtpu: 0.0.40
codegen_flags: <defaults>
</compile_context>

<pallas_src>
import functools

import jax
import jax.numpy as jnp
from jax.experimental import pallas as pl
from jax.experimental.pallas import tpu as pltpu


def _mha_kernel(q_in_ref, kv_in_ref, valid_ref,
                wq_ref, wk_ref, wv_ref, wr_ref, br_ref, ln_g_ref, ln_b_ref,
                out_ref, attn_ref,
                *, num_heads, head_dim, scale, ln_eps):
    # q_in:  (TB, Dq)      -- query = residual (L == 1, squeezed in wrapper)
    # kv_in: (TB, N, Dk)   -- concatenated neighbor node/edge/time features
    # valid: (TB, N)       -- 1.0 = valid neighbor, 0.0 = masked
    q_in = q_in_ref[...]
    kv = kv_in_ref[...]
    valid = valid_ref[...]

    TB, N, Dk = kv.shape
    hdh = num_heads * head_dim

    # --- projections (MXU) ---
    q = jnp.dot(q_in, wq_ref[...], preferred_element_type=jnp.float32)        # (TB, H*Dh)
    kv2 = kv.reshape(TB * N, Dk)
    k = jnp.dot(kv2, wk_ref[...], preferred_element_type=jnp.float32).reshape(TB, N, hdh)
    v = jnp.dot(kv2, wv_ref[...], preferred_element_type=jnp.float32).reshape(TB, N, hdh)

    probs_flat = []   # per-head (TB, N) softmax probabilities
    ctx_list = []     # per-head (TB, Dh) attention outputs
    for h in range(num_heads):
        sl = slice(h * head_dim, (h + 1) * head_dim)
        qh = q[:, sl]                                            # (TB, Dh)
        kh = k[:, :, sl]                                         # (TB, N, Dh)
        vh = v[:, :, sl]                                         # (TB, N, Dh)

        # scores[b, n] = <q[b], k[b, n]> * scale   (single query per node)
        scores = jnp.sum(qh[:, None, :] * kh, axis=-1) * scale   # (TB, N)
        scores = jnp.where(valid > 0.5, scores, -1e10)

        m = jnp.max(scores, axis=-1, keepdims=True)
        e = jnp.exp(scores - m)
        p = e / jnp.sum(e, axis=-1, keepdims=True)               # (TB, N)

        probs_flat.append(p)
        ctx_list.append(jnp.sum(p[:, :, None] * vh, axis=1))     # (TB, Dh)

    # lane-dense single store of attention probs: (TB, H*N)
    attn_ref[...] = jnp.concatenate(probs_flat, axis=-1)

    attn_out = jnp.concatenate(ctx_list, axis=-1)                # (TB, H*Dh)

    # --- residual fc + residual + LayerNorm ---
    o = jnp.dot(attn_out, wr_ref[...], preferred_element_type=jnp.float32) + br_ref[...]
    x = o + q_in
    mu = jnp.mean(x, axis=-1, keepdims=True)
    var = jnp.mean((x - mu) * (x - mu), axis=-1, keepdims=True)
    y = (x - mu) * jax.lax.rsqrt(var + ln_eps)
    out_ref[...] = y * ln_g_ref[...] + ln_b_ref[...]


def multi_head_attention(node_features, node_time_features,
                         neighbor_node_features, neighbor_node_time_features,
                         neighbor_node_edge_features, neighbor_masks,
                         params, *, num_heads, batch_tile=128, ln_eps=1e-5):
    """Forward pass of the MultiHeadAttention module.

    Returns (output (B, query_dim), attention_scores (B, num_heads, num_neighbors)).
    """
    f32 = jnp.float32
    node_features = node_features.astype(f32)
    node_time_features = node_time_features.astype(f32)
    neighbor_node_features = neighbor_node_features.astype(f32)
    neighbor_node_time_features = neighbor_node_time_features.astype(f32)
    neighbor_node_edge_features = neighbor_node_edge_features.astype(f32)

    # query (= residual) with the length-1 dim squeezed: (B, Dq)
    q_in = jnp.concatenate([node_features, node_time_features[:, 0, :]], axis=-1)
    # key/value input, torch concat order: node, edge, time  -> (B, N, Dk)
    kv_in = jnp.concatenate([neighbor_node_features,
                             neighbor_node_edge_features,
                             neighbor_node_time_features], axis=-1)
    valid = jnp.asarray(neighbor_masks != 0, f32)                # (B, N)

    B, N, Dk = kv_in.shape
    Dq = q_in.shape[-1]
    wq, wk, wv = params["Wq"], params["Wk"], params["Wv"]
    wr, br = params["Wr"], params["br"]
    ln_g, ln_b = params["ln_gamma"], params["ln_beta"]
    hdh = wq.shape[1]
    head_dim = hdh // num_heads
    scale = float(head_dim) ** -0.5

    # sublane-aligned batch tile
    tb = batch_tile
    if B < tb:
        tb = ((B + 7) // 8) * 8
    b_pad = ((B + tb - 1) // tb) * tb
    pad = b_pad - B
    if pad:
        q_in = jnp.pad(q_in, ((0, pad), (0, 0)))
        kv_in = jnp.pad(kv_in, ((0, pad), (0, 0), (0, 0)))
        valid = jnp.pad(valid, ((0, pad), (0, 0)))

    kernel = functools.partial(_mha_kernel, num_heads=num_heads,
                               head_dim=head_dim, scale=scale, ln_eps=ln_eps)

    out, attn_flat = pl.pallas_call(
        kernel,
        out_shape=(
            jax.ShapeDtypeStruct((b_pad, Dq), f32),
            jax.ShapeDtypeStruct((b_pad, num_heads * N), f32),
        ),
        grid_spec=pltpu.PrefetchScalarGridSpec(
            num_scalar_prefetch=0,
            grid=(b_pad // tb,),
            in_specs=[
                pl.BlockSpec((tb, Dq), lambda i: (i, 0)),          # q_in
                pl.BlockSpec((tb, N, Dk), lambda i: (i, 0, 0)),    # kv_in
                pl.BlockSpec((tb, N), lambda i: (i, 0)),           # valid mask
                pl.BlockSpec((Dq, hdh), lambda i: (0, 0)),         # Wq (resident)
                pl.BlockSpec((Dk, hdh), lambda i: (0, 0)),         # Wk
                pl.BlockSpec((Dk, hdh), lambda i: (0, 0)),         # Wv
                pl.BlockSpec((hdh, Dq), lambda i: (0, 0)),         # Wr
                pl.BlockSpec((1, Dq), lambda i: (0, 0)),           # br
                pl.BlockSpec((1, Dq), lambda i: (0, 0)),           # ln gamma
                pl.BlockSpec((1, Dq), lambda i: (0, 0)),           # ln beta
            ],
            out_specs=[
                pl.BlockSpec((tb, Dq), lambda i: (i, 0)),
                pl.BlockSpec((tb, num_heads * N), lambda i: (i, 0)),
            ],
        ),
        compiler_params=pltpu.CompilerParams(
            dimension_semantics=("parallel",),
        ),
    )(q_in, kv_in, valid, wq, wk, wv, wr,
      br.reshape(1, Dq), ln_g.reshape(1, Dq), ln_b.reshape(1, Dq))

    attn = attn_flat.reshape(b_pad, num_heads, N)
    return out[:B], attn[:B]


def mha_reference(node_feat, node_time, nbr_feat, nbr_time, nbr_edge, nbr_mask,
                  params, num_heads, ln_eps=1e-5):
    hp = jax.lax.Precision.HIGHEST
    q_in = jnp.concatenate([node_feat[:, None, :], node_time], axis=2)      # (B,1,Dq)
    residual = q_in
    kv_in = jnp.concatenate([nbr_feat, nbr_edge, nbr_time], axis=2)         # (B,N,Dk)
    B, N, _ = kv_in.shape
    hdh = params["Wq"].shape[1]
    dh = hdh // num_heads
    q = jnp.einsum("blq,qd->bld", q_in, params["Wq"], precision=hp)
    q = q.reshape(B, 1, num_heads, dh).transpose(0, 2, 1, 3)
    k = jnp.einsum("bnk,kd->bnd", kv_in, params["Wk"], precision=hp)
    k = k.reshape(B, N, num_heads, dh).transpose(0, 2, 1, 3)
    v = jnp.einsum("bnk,kd->bnd", kv_in, params["Wv"], precision=hp)
    v = v.reshape(B, N, num_heads, dh).transpose(0, 2, 1, 3)
    attn = jnp.einsum("bhld,bhnd->bhln", q, k, precision=hp) * (dh ** -0.5)
    mask0 = (nbr_mask == 0)[:, None, None, :]
    attn = jnp.where(mask0, -1e10, attn)
    p = jax.nn.softmax(attn, axis=-1)
    ctx = jnp.einsum("bhln,bhnd->bhld", p, v, precision=hp)
    ctx = ctx.transpose(0, 2, 1, 3).reshape(B, 1, hdh)
    o = jnp.einsum("blh,hq->blq", ctx, params["Wr"], precision=hp) + params["br"]
    x = o + residual
    mu = jnp.mean(x, axis=-1, keepdims=True)
    var = jnp.mean((x - mu) ** 2, axis=-1, keepdims=True)
    y = (x - mu) / jnp.sqrt(var + ln_eps) * params["ln_gamma"] + params["ln_beta"]
    return y[:, 0, :], p[:, :, 0, :]


if __name__ == "__main__":
    key = jax.random.PRNGKey(0)
    ks = jax.random.split(key, 12)

    # small shapes consistent with the module
    B, N = 2, 8
    node_feat_dim, edge_feat_dim, time_feat_dim = 32, 16, 32
    num_heads = 2
    Dq = node_feat_dim + time_feat_dim                       # 64
    Dk = node_feat_dim + time_feat_dim + edge_feat_dim       # 80
    head_dim = Dq // num_heads                               # 32

    node_feat = jax.random.normal(ks[0], (B, node_feat_dim), jnp.float32)
    node_time = jax.random.normal(ks[1], (B, 1, time_feat_dim), jnp.float32)
    nbr_feat = jax.random.normal(ks[2], (B, N, node_feat_dim), jnp.float32)
    nbr_time = jax.random.normal(ks[3], (B, N, time_feat_dim), jnp.float32)
    nbr_edge = jax.random.normal(ks[4], (B, N, edge_feat_dim), jnp.float32)
    nbr_mask = (jax.random.uniform(ks[5], (B, N)) > 0.3).astype(jnp.float32)
    nbr_mask = nbr_mask.at[:, 0].set(1.0)   # at least one valid neighbor per node

    params = {
        "Wq": jax.random.normal(ks[6], (Dq, num_heads * head_dim), jnp.float32) * (Dq ** -0.5),
        "Wk": jax.random.normal(ks[7], (Dk, num_heads * head_dim), jnp.float32) * (Dk ** -0.5),
        "Wv": jax.random.normal(ks[8], (Dk, num_heads * head_dim), jnp.float32) * (Dk ** -0.5),
        "Wr": jax.random.normal(ks[9], (num_heads * head_dim, Dq), jnp.float32)
              * ((num_heads * head_dim) ** -0.5),
        "br": jax.random.normal(ks[10], (Dq,), jnp.float32) * 0.1,
        "ln_gamma": jnp.ones((Dq,), jnp.float32),
        "ln_beta": jnp.zeros((Dq,), jnp.float32),
    }

    out, attn = multi_head_attention(node_feat, node_time, nbr_feat, nbr_time,
                                     nbr_edge, nbr_mask, params, num_heads=num_heads)
    out = jax.block_until_ready(out)
    attn = jax.block_until_ready(attn)

    out_ref, attn_ref = mha_reference(node_feat, node_time, nbr_feat, nbr_time,
                                      nbr_edge, nbr_mask, params, num_heads)

    assert out.shape == (B, Dq) and attn.shape == (B, num_heads, N), (out.shape, attn.shape)
    assert jnp.allclose(out, out_ref, atol=1e-3, rtol=1e-3), (
        float(jnp.max(jnp.abs(out - out_ref))))
    assert jnp.allclose(attn, attn_ref, atol=1e-3, rtol=1e-3), (
        float(jnp.max(jnp.abs(attn - attn_ref))))

    print("KERNEL_OK")
</pallas_src>

<mosaic_0001>
module attributes {stable_mosaic.version = 11 : i64} {
  func.func @_mha_kernel(%arg0: i32, %arg1: memref<8x64xf32, #tpu.memory_space<vmem>>, %arg2: memref<8x8x80xf32, #tpu.memory_space<vmem>>, %arg3: memref<8x8xf32, #tpu.memory_space<vmem>>, %arg4: memref<64x64xf32, #tpu.memory_space<vmem>>, %arg5: memref<80x64xf32, #tpu.memory_space<vmem>>, %arg6: memref<80x64xf32, #tpu.memory_space<vmem>>, %arg7: memref<64x64xf32, #tpu.memory_space<vmem>>, %arg8: memref<1x64xf32, #tpu.memory_space<vmem>>, %arg9: memref<1x64xf32, #tpu.memory_space<vmem>>, %arg10: memref<1x64xf32, #tpu.memory_space<vmem>>, %arg11: memref<8x64xf32, #tpu.memory_space<vmem>>, %arg12: memref<8x16xf32, #tpu.memory_space<vmem>>) attributes {dimension_semantics = [#tpu.dimension_semantics<parallel>], iteration_bounds = array<i64: 1>, scalar_prefetch = 0 : i64, scratch_operands = 0 : i64, tpu.core_type = #tpu.core_type<tc>, window_params = [{transform_indices = @transform_0, window_bounds = array<i64: 8, 64>}, {transform_indices = @transform_1, window_bounds = array<i64: 8, 8, 80>}, {transform_indices = @transform_2, window_bounds = array<i64: 8, 8>}, {pipeline_mode = #tpu.pipeline_mode<synchronous>, transform_indices = @transform_3, window_bounds = array<i64: 64, 64>}, {pipeline_mode = #tpu.pipeline_mode<synchronous>, transform_indices = @transform_4, window_bounds = array<i64: 80, 64>}, {pipeline_mode = #tpu.pipeline_mode<synchronous>, transform_indices = @transform_5, window_bounds = array<i64: 80, 64>}, {pipeline_mode = #tpu.pipeline_mode<synchronous>, transform_indices = @transform_6, window_bounds = array<i64: 64, 64>}, {pipeline_mode = #tpu.pipeline_mode<synchronous>, transform_indices = @transform_7, window_bounds = array<i64: 1, 64>}, {pipeline_mode = #tpu.pipeline_mode<synchronous>, transform_indices = @transform_8, window_bounds = array<i64: 1, 64>}, {pipeline_mode = #tpu.pipeline_mode<synchronous>, transform_indices = @transform_9, window_bounds = array<i64: 1, 64>}, {transform_indices = @transform_10, window_bounds = array<i64: 8, 64>}, {transform_indices = @transform_11, window_bounds = array<i64: 8, 16>}]} {
    %c0 = arith.constant 0 : index
    %c0_0 = arith.constant 0 : index
    %0 = vector.load %arg1[%c0, %c0_0] : memref<8x64xf32, #tpu.memory_space<vmem>>, vector<8x64xf32>
    %c0_1 = arith.constant 0 : index
    %c0_2 = arith.constant 0 : index
    %c0_3 = arith.constant 0 : index
    %1 = vector.load %arg2[%c0_1, %c0_2, %c0_3] : memref<8x8x80xf32, #tpu.memory_space<vmem>>, vector<8x8x80xf32>
    %c0_4 = arith.constant 0 : index
    %c0_5 = arith.constant 0 : index
    %2 = vector.load %arg3[%c0_4, %c0_5] : memref<8x8xf32, #tpu.memory_space<vmem>>, vector<8x8xf32>
    %c0_6 = arith.constant 0 : index
    %c0_7 = arith.constant 0 : index
    %3 = vector.load %arg4[%c0_6, %c0_7] : memref<64x64xf32, #tpu.memory_space<vmem>>, vector<64x64xf32>
    %cst = arith.constant dense<0.000000e+00> : vector<8x64xf32>
    %4 = tpu.matmul %0, %3, %cst {dimension_numbers = #tpu.dot_dimension_numbers<[1], [0], [0], [1], [0, 0, 1, 1], [], []>} : vector<8x64xf32>, vector<64x64xf32>, vector<8x64xf32> -> vector<8x64xf32>
    %5 = vector.shape_cast %1 : vector<8x8x80xf32> to vector<64x80xf32>
    %c0_8 = arith.constant 0 : index
    %c0_9 = arith.constant 0 : index
    %6 = vector.load %arg5[%c0_8, %c0_9] : memref<80x64xf32, #tpu.memory_space<vmem>>, vector<80x64xf32>
    %cst_10 = arith.constant dense<0.000000e+00> : vector<64x64xf32>
    %7 = tpu.matmul %5, %6, %cst_10 {dimension_numbers = #tpu.dot_dimension_numbers<[1], [0], [0], [1], [0, 0, 1, 1], [], []>} : vector<64x80xf32>, vector<80x64xf32>, vector<64x64xf32> -> vector<64x64xf32>
    %8 = vector.shape_cast %7 : vector<64x64xf32> to vector<8x8x64xf32>
    %c0_11 = arith.constant 0 : index
    %c0_12 = arith.constant 0 : index
    %9 = vector.load %arg6[%c0_11, %c0_12] : memref<80x64xf32, #tpu.memory_space<vmem>>, vector<80x64xf32>
    %cst_13 = arith.constant dense<0.000000e+00> : vector<64x64xf32>
    %10 = tpu.matmul %5, %9, %cst_13 {dimension_numbers = #tpu.dot_dimension_numbers<[1], [0], [0], [1], [0, 0, 1, 1], [], []>} : vector<64x80xf32>, vector<80x64xf32>, vector<64x64xf32> -> vector<64x64xf32>
    %11 = vector.shape_cast %10 : vector<64x64xf32> to vector<8x8x64xf32>
    %12 = vector.extract_strided_slice %4 {offsets = [0, 0], sizes = [8, 32], strides = [1, 1]} : vector<8x64xf32> to vector<8x32xf32>
    %13 = vector.extract_strided_slice %8 {offsets = [0, 0, 0], sizes = [8, 8, 32], strides = [1, 1, 1]} : vector<8x8x64xf32> to vector<8x8x32xf32>
    %14 = vector.extract_strided_slice %11 {offsets = [0, 0, 0], sizes = [8, 8, 32], strides = [1, 1, 1]} : vector<8x8x64xf32> to vector<8x8x32xf32>
    %15 = vector.shape_cast %12 : vector<8x32xf32> to vector<8x1x32xf32>
    %16 = vector.broadcast %15 : vector<8x1x32xf32> to vector<8x8x32xf32>
    %17 = arith.mulf %16, %13 : vector<8x8x32xf32>
    %cst_14 = arith.constant dense<0.000000e+00> : vector<8x8xf32>
    %18 = vector.multi_reduction <add>, %17, %cst_14 [2] : vector<8x8x32xf32> to vector<8x8xf32>
    %cst_15 = arith.constant 0.176776692 : f32
    %19 = vector.broadcast %cst_15 : f32 to vector<8x8xf32>
    %20 = arith.mulf %18, %19 : vector<8x8xf32>
    %cst_16 = arith.constant 5.000000e-01 : f32
    %21 = vector.broadcast %cst_16 : f32 to vector<8x8xf32>
    %22 = arith.cmpf ogt, %2, %21 : vector<8x8xf32>
    %cst_17 = arith.constant -1.000000e+10 : f32
    %23 = vector.broadcast %cst_17 : f32 to vector<8x8xf32>
    %24 = arith.select %22, %20, %23 : vector<8x8xi1>, vector<8x8xf32>
    %cst_18 = arith.constant dense<0xFF800000> : vector<8xf32>
    %25 = vector.multi_reduction <maximumf>, %24, %cst_18 [1] : vector<8x8xf32> to vector<8xf32>
    %26 = vector.shape_cast %25 : vector<8xf32> to vector<8x1xf32>
    %27 = vector.broadcast %26 : vector<8x1xf32> to vector<8x8xf32>
    %28 = arith.subf %24, %27 : vector<8x8xf32>
    %29 = math.exp %28 : vector<8x8xf32>
    %cst_19 = arith.constant dense<0.000000e+00> : vector<8xf32>
    %30 = vector.multi_reduction <add>, %29, %cst_19 [1] : vector<8x8xf32> to vector<8xf32>
    %31 = vector.shape_cast %30 : vector<8xf32> to vector<8x1xf32>
    %32 = vector.broadcast %31 : vector<8x1xf32> to vector<8x8xf32>
    %33 = arith.divf %29, %32 : vector<8x8xf32>
    %34 = vector.shape_cast %33 : vector<8x8xf32> to vector<8x8x1xf32>
    %35 = vector.broadcast %34 : vector<8x8x1xf32> to vector<8x8x32xf32>
    %36 = arith.mulf %35, %14 : vector<8x8x32xf32>
    %cst_20 = arith.constant dense<0.000000e+00> : vector<8x32xf32>
    %37 = vector.multi_reduction <add>, %36, %cst_20 [1] : vector<8x8x32xf32> to vector<8x32xf32>
    %38 = vector.extract_strided_slice %4 {offsets = [0, 32], sizes = [8, 32], strides = [1, 1]} : vector<8x64xf32> to vector<8x32xf32>
    %39 = vector.extract_strided_slice %8 {offsets = [0, 0, 32], sizes = [8, 8, 32], strides = [1, 1, 1]} : vector<8x8x64xf32> to vector<8x8x32xf32>
    %40 = vector.extract_strided_slice %11 {offsets = [0, 0, 32], sizes = [8, 8, 32], strides = [1, 1, 1]} : vector<8x8x64xf32> to vector<8x8x32xf32>
    %41 = vector.shape_cast %38 : vector<8x32xf32> to vector<8x1x32xf32>
    %42 = vector.broadcast %41 : vector<8x1x32xf32> to vector<8x8x32xf32>
    %43 = arith.mulf %42, %39 : vector<8x8x32xf32>
    %cst_21 = arith.constant dense<0.000000e+00> : vector<8x8xf32>
    %44 = vector.multi_reduction <add>, %43, %cst_21 [2] : vector<8x8x32xf32> to vector<8x8xf32>
    %cst_22 = arith.constant 0.176776692 : f32
    %45 = vector.broadcast %cst_22 : f32 to vector<8x8xf32>
    %46 = arith.mulf %44, %45 : vector<8x8xf32>
    %cst_23 = arith.constant 5.000000e-01 : f32
    %47 = vector.broadcast %cst_23 : f32 to vector<8x8xf32>
    %48 = arith.cmpf ogt, %2, %47 : vector<8x8xf32>
    %cst_24 = arith.constant -1.000000e+10 : f32
    %49 = vector.broadcast %cst_24 : f32 to vector<8x8xf32>
    %50 = arith.select %48, %46, %49 : vector<8x8xi1>, vector<8x8xf32>
    %cst_25 = arith.constant dense<0xFF800000> : vector<8xf32>
    %51 = vector.multi_reduction <maximumf>, %50, %cst_25 [1] : vector<8x8xf32> to vector<8xf32>
    %52 = vector.shape_cast %51 : vector<8xf32> to vector<8x1xf32>
    %53 = vector.broadcast %52 : vector<8x1xf32> to vector<8x8xf32>
    %54 = arith.subf %50, %53 : vector<8x8xf32>
    %55 = math.exp %54 : vector<8x8xf32>
    %cst_26 = arith.constant dense<0.000000e+00> : vector<8xf32>
    %56 = vector.multi_reduction <add>, %55, %cst_26 [1] : vector<8x8xf32> to vector<8xf32>
    %57 = vector.shape_cast %56 : vector<8xf32> to vector<8x1xf32>
    %58 = vector.broadcast %57 : vector<8x1xf32> to vector<8x8xf32>
    %59 = arith.divf %55, %58 : vector<8x8xf32>
    %60 = vector.shape_cast %59 : vector<8x8xf32> to vector<8x8x1xf32>
    %61 = vector.broadcast %60 : vector<8x8x1xf32> to vector<8x8x32xf32>
    %62 = arith.mulf %61, %40 : vector<8x8x32xf32>
    %cst_27 = arith.constant dense<0.000000e+00> : vector<8x32xf32>
    %63 = vector.multi_reduction <add>, %62, %cst_27 [1] : vector<8x8x32xf32> to vector<8x32xf32>
    %64 = tpu.concatenate %33, %59 in 1 : vector<8x8xf32>, vector<8x8xf32> -> vector<8x16xf32>
    %c0_28 = arith.constant 0 : index
    %c0_29 = arith.constant 0 : index
    %65 = vector.load %arg12[%c0_28, %c0_29] : memref<8x16xf32, #tpu.memory_space<vmem>>, vector<8x16xf32>
    tpu.vector_store %arg12[%c0_28, %c0_29], %64 {strides = array<i32>} : memref<8x16xf32, #tpu.memory_space<vmem>>, vector<8x16xf32>,
    %66 = tpu.concatenate %37, %63 in 1 : vector<8x32xf32>, vector<8x32xf32> -> vector<8x64xf32>
    %c0_30 = arith.constant 0 : index
    %c0_31 = arith.constant 0 : index
    %67 = vector.load %arg7[%c0_30, %c0_31] : memref<64x64xf32, #tpu.memory_space<vmem>>, vector<64x64xf32>
    %cst_32 = arith.constant dense<0.000000e+00> : vector<8x64xf32>
    %68 = tpu.matmul %66, %67, %cst_32 {dimension_numbers = #tpu.dot_dimension_numbers<[1], [0], [0], [1], [0, 0, 1, 1], [], []>} : vector<8x64xf32>, vector<64x64xf32>, vector<8x64xf32> -> vector<8x64xf32>
    %c0_33 = arith.constant 0 : index
    %c0_34 = arith.constant 0 : index
    %69 = vector.load %arg8[%c0_33, %c0_34] : memref<1x64xf32, #tpu.memory_space<vmem>>, vector<1x64xf32>
    %70 = vector.broadcast %69 : vector<1x64xf32> to vector<8x64xf32>
    %71 = arith.addf %68, %70 : vector<8x64xf32>
    %72 = arith.addf %71, %0 : vector<8x64xf32>
    %cst_35 = arith.constant dense<0.000000e+00> : vector<8xf32>
    %73 = vector.multi_reduction <add>, %72, %cst_35 [1] : vector<8x64xf32> to vector<8xf32>
    %74 = vector.shape_cast %73 : vector<8xf32> to vector<8x1xf32>
    %cst_36 = arith.constant 6.400000e+01 : f32
    %75 = vector.broadcast %cst_36 : f32 to vector<8x1xf32>
    %76 = arith.divf %74, %75 : vector<8x1xf32>
    %77 = vector.broadcast %76 : vector<8x1xf32> to vector<8x64xf32>
    %78 = arith.subf %72, %77 : vector<8x64xf32>
    %79 = vector.broadcast %76 : vector<8x1xf32> to vector<8x64xf32>
    %80 = arith.subf %72, %79 : vector<8x64xf32>
    %81 = arith.mulf %78, %80 : vector<8x64xf32>
    %cst_37 = arith.constant dense<0.000000e+00> : vector<8xf32>
    %82 = vector.multi_reduction <add>, %81, %cst_37 [1] : vector<8x64xf32> to vector<8xf32>
    %83 = vector.shape_cast %82 : vector<8xf32> to vector<8x1xf32>
    %cst_38 = arith.constant 6.400000e+01 : f32
    %84 = vector.broadcast %cst_38 : f32 to vector<8x1xf32>
    %85 = arith.divf %83, %84 : vector<8x1xf32>
    %86 = vector.broadcast %76 : vector<8x1xf32> to vector<8x64xf32>
    %87 = arith.subf %72, %86 : vector<8x64xf32>
    %cst_39 = arith.constant 9.99999974E-6 : f32
    %88 = vector.broadcast %cst_39 : f32 to vector<8x1xf32>
    %89 = arith.addf %85, %88 : vector<8x1xf32>
    %90 = math.rsqrt %89 : vector<8x1xf32>
    %91 = vector.broadcast %90 : vector<8x1xf32> to vector<8x64xf32>
    %92 = arith.mulf %87, %91 : vector<8x64xf32>
    %c0_40 = arith.constant 0 : index
    %c0_41 = arith.constant 0 : index
    %93 = vector.load %arg9[%c0_40, %c0_41] : memref<1x64xf32, #tpu.memory_space<vmem>>, vector<1x64xf32>
    %94 = vector.broadcast %93 : vector<1x64xf32> to vector<8x64xf32>
    %95 = arith.mulf %92, %94 : vector<8x64xf32>
    %c0_42 = arith.constant 0 : index
    %c0_43 = arith.constant 0 : index
    %96 = vector.load %arg10[%c0_42, %c0_43] : memref<1x64xf32, #tpu.memory_space<vmem>>, vector<1x64xf32>
    %97 = vector.broadcast %96 : vector<1x64xf32> to vector<8x64xf32>
    %98 = arith.addf %95, %97 : vector<8x64xf32>
    %c0_44 = arith.constant 0 : index
    %c0_45 = arith.constant 0 : index
    %99 = vector.load %arg11[%c0_44, %c0_45] : memref<8x64xf32, #tpu.memory_space<vmem>>, vector<8x64xf32>
    tpu.vector_store %arg11[%c0_44, %c0_45], %98 {strides = array<i32>} : memref<8x64xf32, #tpu.memory_space<vmem>>, vector<8x64xf32>,
    return
  }
  func.func @transform_0(%arg0: i32) -> (i32, i32) {
    %c0_i32 = arith.constant 0 : i32
    %c0_i32_0 = arith.constant 0 : i32
    return %arg0, %c0_i32 : i32, i32
  }
  func.func @transform_1(%arg0: i32) -> (i32, i32, i32) {
    %c0_i32 = arith.constant 0 : i32
    %c0_i32_0 = arith.constant 0 : i32
    %c0_i32_1 = arith.constant 0 : i32
    return %arg0, %c0_i32, %c0_i32_0 : i32, i32, i32
  }
  func.func @transform_2(%arg0: i32) -> (i32, i32) {
    %c0_i32 = arith.constant 0 : i32
    %c0_i32_0 = arith.constant 0 : i32
    return %arg0, %c0_i32 : i32, i32
  }
  func.func @transform_3(%arg0: i32) -> (i32, i32) {
    %c0_i32 = arith.constant 0 : i32
    %c0_i32_0 = arith.constant 0 : i32
    %c0_i32_1 = arith.constant 0 : i32
    return %c0_i32, %c0_i32_0 : i32, i32
  }
  func.func @transform_4(%arg0: i32) -> (i32, i32) {
    %c0_i32 = arith.constant 0 : i32
    %c0_i32_0 = arith.constant 0 : i32
    %c0_i32_1 = arith.constant 0 : i32
    return %c0_i32, %c0_i32_0 : i32, i32
  }
  func.func @transform_5(%arg0: i32) -> (i32, i32) {
    %c0_i32 = arith.constant 0 : i32
    %c0_i32_0 = arith.constant 0 : i32
    %c0_i32_1 = arith.constant 0 : i32
    return %c0_i32, %c0_i32_0 : i32, i32
  }
  func.func @transform_6(%arg0: i32) -> (i32, i32) {
    %c0_i32 = arith.constant 0 : i32
    %c0_i32_0 = arith.constant 0 : i32
    %c0_i32_1 = arith.constant 0 : i32
    return %c0_i32, %c0_i32_0 : i32, i32
  }
  func.func @transform_7(%arg0: i32) -> (i32, i32) {
    %c0_i32 = arith.constant 0 : i32
    %c0_i32_0 = arith.constant 0 : i32
    %c0_i32_1 = arith.constant 0 : i32
    return %c0_i32, %c0_i32_0 : i32, i32
  }
  func.func @transform_8(%arg0: i32) -> (i32, i32) {
    %c0_i32 = arith.constant 0 : i32
    %c0_i32_0 = arith.constant 0 : i32
    %c0_i32_1 = arith.constant 0 : i32
    return %c0_i32, %c0_i32_0 : i32, i32
  }
  func.func @transform_9(%arg0: i32) -> (i32, i32) {
    %c0_i32 = arith.constant 0 : i32
    %c0_i32_0 = arith.constant 0 : i32
    %c0_i32_1 = arith.constant 0 : i32
    return %c0_i32, %c0_i32_0 : i32, i32
  }
  func.func @transform_10(%arg0: i32) -> (i32, i32) {
    %c0_i32 = arith.constant 0 : i32
    %c0_i32_0 = arith.constant 0 : i32
    return %arg0, %c0_i32 : i32, i32
  }
  func.func @transform_11(%arg0: i32) -> (i32, i32) {
    %c0_i32 = arith.constant 0 : i32
    %c0_i32_0 = arith.constant 0 : i32
    return %arg0, %c0_i32 : i32, i32
  }
}

</mosaic_0001>

<bundles_post_ra>
// kernel: tpu_custom_call.1
= control target key start
LH: loop header
LB: loop body
LE: loop exit
PB: predicated region body
PF: predicated region fallthrough
CT: control target
= control target key end

     0   :  { %17 = vsyncpa [#allocation3], 0  ;;  %v1379_v3 = vmov 0.0   ;;  %s1825_s0 = inlined_call_operand.vmem [shape: f32[8,64], index: 0, kind: input, shape index: {}]   ;;  %s1826_s1 = inlined_call_operand.vmem [shape: f32[8,8,80], index: 1, kind: input, shape index: {}]   ;;  %s1827_s2 = inlined_call_operand.vmem [shape: f32[8,8], index: 2, kind: input, shape index: {}]   ;;  %s1828_s3 = inlined_call_operand.vmem [shape: f32[64,64], index: 3, kind: input, shape index: {}]   ;;  %s1829_s4 = inlined_call_operand.vmem [shape: f32[80,64], index: 4, kind: input, shape index: {}]   ;;  %s1830_s5 = inlined_call_operand.vmem [shape: f32[80,64], index: 5, kind: input, shape index: {}]   ;;  %s1831_s6 = inlined_call_operand.vmem [shape: f32[64,64], index: 6, kind: input, shape index: {}]   ;;  %s1832_s7 = inlined_call_operand.vmem [shape: f32[1,64], index: 7, kind: input, shape index: {}]   ;;  %s1833_s8 = inlined_call_operand.vmem [shape: f32[1,64], index: 8, kind: input, shape index: {}]   ;;  %s1834_s9 = inlined_call_operand.vmem [shape: f32[1,64], index: 9, kind: input, shape index: {}]   ;;  %s1835_s10 = inlined_call_operand.hbm [shape: f32[8,64], index: 10, kind: output, shape index: {0}]   ;;  %s1836_s11 = inlined_call_operand.hbm [shape: f32[8,16], index: 11, kind: output, shape index: {1}]  }
   0x1   :  { %v140_v0 = vld [vmem:[%s1829_s4 + $0x48] sm:$0xff]  ;;  %v56_v1 = vld [vmem:[%s1828_s3 + $0x38] sm:$0xff]  ;;  %v139_v2 = vld [vmem:[%s1829_s4 + $0x40] sm:$0xff]  ;;  %1216 = vmatprep.subr.mxu0 %v1379_v3 }
   0x2   :  { %1235 = vmatprep.subr.mxu1 %v140_v0  ;;  %v55_v4 = vld [vmem:[%s1828_s3 + $0x30] sm:$0xff]  ;;  %1217 = vmatpush3.msra.mxu0 %v56_v1  ;;  %v138_v5 = vld [vmem:[%s1829_s4 + $0x38] sm:$0xff]  ;;  %v54_v6 = vld [vmem:[%s1828_s3 + $0x28] sm:$0xff] }
   0x3   :  { %1236 = vmatpush3.msra.mxu1 %v140_v0  ;;  %1218 = vmatprep.subr.mxu0 %v1379_v3  ;;  %v137_v7 = vld [vmem:[%s1829_s4 + $0x30] sm:$0xff]  ;;  %v53_v8 = vld [vmem:[%s1828_s3 + $0x20] sm:$0xff]  ;;  %v136_v9 = vld [vmem:[%s1829_s4 + $0x28] sm:$0xff] }
   0x4   :  { %1237 = vmatprep.subr.mxu1 %v139_v2  ;;  %1219 = vmatpush3.msra.mxu0 %v55_v4  ;;  %v52_v10 = vld [vmem:[%s1828_s3 + $0x18] sm:$0xff]  ;;  %v135_v11 = vld [vmem:[%s1829_s4 + $0x20] sm:$0xff]  ;;  %v51_v12 = vld [vmem:[%s1828_s3 + $0x10] sm:$0xff] }
   0x5   :  { %1238 = vmatpush3.msra.mxu1 %v139_v2  ;;  %1220 = vmatprep.subr.mxu0 %v1379_v3 }
   0x6   :  { %1239 = vmatprep.subr.mxu1 %v138_v5  ;;  %1221 = vmatpush3.msra.mxu0 %v54_v6 }
   0x7   :  { %1240 = vmatpush3.msra.mxu1 %v138_v5  ;;  %1222 = vmatprep.subr.mxu0 %v1379_v3 }
   0x8   :  { %1241 = vmatprep.subr.mxu1 %v137_v7  ;;  %1223 = vmatpush3.msra.mxu0 %v53_v8 }
   0x9   :  { %1242 = vmatpush3.msra.mxu1 %v137_v7  ;;  %1224 = vmatprep.subr.mxu0 %v1379_v3 }
   0xa   :  { %1243 = vmatprep.subr.mxu1 %v136_v9 }
   0xb   :  { %18 = vsyncpa [#allocation5], 0  ;;  %1225 = vmatpush3.msra.mxu0 %v52_v10  ;;  %1244 = vmatpush3.msra.mxu1 %v136_v9  ;;  %v134_v13 = vld [vmem:[%s1829_s4 + $0x18] sm:$0xff]  ;;  %v50_v14 = vld [vmem:[%s1828_s3 + $0x8] sm:$0xff]  ;;  %vm57_vm0 = vcmask 523264   ;;  %vm141_vm1 = vcmask 654336   ;;  %v391_v30 = vlaneseq }
   0xc   :  { %1226 = vmatprep.subr.mxu0 %v1379_v3  ;;  %1245 = vmatprep.subr.mxu1 %v135_v11  ;;  %v133_v15 = vld [vmem:[%s1829_s4 + $0x10] sm:$0xff]  ;;  %v49_v16 = vld [vmem:[%s1828_s3] sm:$0xff]  ;;  %v132_v18 = vld [vmem:[%s1829_s4 + $0x8] sm:$0xff]  ;;  %vm1380_vm2 = vmmov 0   ;;  %v1381_v28 = vmov 1966171168  }
   0xd   :  { %1227 = vmatpush3.msra.mxu0 %v51_v12  ;;  %1246 = vmatpush3.msra.mxu1 %v135_v11  ;;  %v1504_v17 = vld [vmem:[%s1825_s0] sm:$0xff]  ;;  %v1524_v21 = vld [vmem:[%s1826_s1 + $0x8] sm:$0xff]  ;;  %v1530_v22 = vld [vmem:[%s1826_s1 + $0x10] sm:$0xff]  ;;  %v389_v29 = vunpack.c.l.s4 %v1381_v28  ;;  %v1575_v32 = vshrl.u32 %v391_v30, 7  ;;  %vm484_vm3 = vcmask 261120   ;;  %vm560_vm4 = vcmask 1041409  }
   0xe   :  { %1228 = vmatprep.subr.mxu0 %v1379_v3  ;;  %1247 = vmatprep.subr.mxu1 %v134_v13  ;;  %v40_v19 = vld [vmem:[%s1826_s1] sm:$0xff]  ;;  %v1540_v23 = vld [vmem:[%s1826_s1 + $0x18] sm:$0xff]  ;;  %v1554_v25 = vld [vmem:[%s1826_s1 + $0x28] sm:$0xff]  ;;  %vm562_vm5 = vcmask 1042434   ;;  %vm564_vm6 = vcmask 1043459   ;;  %vm566_vm7 = vcmask 1044484  }
   0xf   :  { %1229 = vmatpush3.msra.mxu0 %v50_v14  ;;  %1248 = vmatpush3.msra.mxu1 %v134_v13  ;;  %v131_v20 = vld [vmem:[%s1829_s4] sm:$0xff]  ;;  %v1559_v26 = vld [vmem:[%s1826_s1 + $0x30] sm:$0xff]  ;;  %v1568_v27 = vld [vmem:[%s1826_s1 + $0x38] sm:$0xff]  ;;  %v390_v31 = vunpack.c.0.s8 %v389_v29  ;;  %v1579_v36 = vsub.s32 0, %v1575_v32  ;;  %vm568_vm8 = vcmask 1045509   ;;  %vm570_vm9 = vcmask 1046534  }
  0x10   :  { %1230 = vmatprep.subr.mxu0 %v1379_v3  ;;  %1249 = vmatprep.subr.mxu1 %v133_v15  ;;  %v1545_v24 = vld [vmem:[%s1826_s1 + $0x20] sm:$0xff]  ;;  %s1382_s1 = smov 96   ;;  %vm572_vm10 = vcmask 1047559   ;;  %vm576_vm12 = vcmask 64512   ;;  %vm896_vm13 = vcmask 523520   ;;  %s1383_s21 = smov 8  }
  0x11   :  { %1231 = vmatpush3.msra.mxu0 %v49_v16  ;;  %1232 = vmatprep.mubr.msk.f32.mxu0 %vm1380_vm2, %v1379_v3  ;;  %v393_v33 = vsub.s32 %v390_v31, %v1575_v32  ;;  %vm958_vm14 = vcmask 130048  }
  0x12   :  { %1250 = vmatpush3.msra.mxu1 %v133_v15  ;;  %1233 = vmatmul.mubr.msk.f32.vlgmr.msra.gmra.mxu0 %vm57_vm0, %v1504_v17 }
  0x13   :  { %1251 = vmatprep.subr.mxu1 %v132_v18  ;;  %1255 = vmatprep.mubr.msk.f32.mxu1 %vm141_vm1, %v40_v19 }
  0x14   :  { %1252 = vmatpush3.msra.mxu1 %v132_v18  ;;  %1287 = vmatprep.mubr.msk.f32.mxu0 %vm141_vm1, %v40_v19 }
  0x15   :  { %1253 = vmatprep.subr.mxu1 %v131_v20 }
  0x16   :  { %1254 = vmatpush3.msra.mxu1 %v131_v20 }
  0x17   :  { %1256 = vmatmul.mubr.msk.f32.vlgmr.msra.gmra.mxu1 %vm141_vm1, %v1524_v21  ;;  %1299 = vmatprep.subr.mxu1 %v1379_v3 }
  0x18   :  { %1258 = vmatprep.mubr.msk.f32.mxu1 %vm141_vm1, %v1530_v22 }
  0x1b   :  { %1259 = vmatmul.mubr.msk.f32.gmra.mxu1 %vm141_vm1, %v1540_v23 }
  0x1c   :  { %1261 = vmatprep.mubr.msk.f32.mxu1 %vm141_vm1, %v1545_v24 }
  0x1f   :  { %1262 = vmatmul.mubr.msk.f32.gmra.mxu1 %vm141_vm1, %v1554_v25 }
  0x20   :  { %1264 = vmatprep.mubr.msk.f32.mxu1 %vm141_vm1, %v1559_v26 }
  0x23   :  { %1265 = vmatmul.mubr.msk.f32.gmra.mxu1 %vm141_vm1, %v1568_v27 }
  0x24   :  { %1315 = vmatprep.mubr.msk.f32.mxu1 %vm1380_vm2, %v1379_v3 }
  0xd2   :  { %v127_v34 = vpop.f32.mrf.mxu0 }
  0xd3   :  { %v394_v35 = vrot.slane %v127_v34, %v393_v33  ;;  %v387_v37 = vcombine.high %v127_v34, %v127_v34 }
  0xd4   :  { %v1234_v38 = vpop.f32.mrf.mxu0 }
  0xd5   :  { %v402_v39 = vcombine.high %v394_v35, %v394_v35  ;;  %v410_v40 = vrot.slane %v394_v35, %v393_v33  ;;  %v401_v44 = vrot.slane %v387_v37, %v393_v33 }
  0xd7   :  { %v1257_v41 = vpop.f32.mrf.mxu1  ;;  %v424_v42 = vrot.slane %v402_v39, %v393_v33  ;;  %v439_v43 = vrot.slane %v410_v40, %v1579_v36  ;;  %v432_v45 = vcombine.high %v410_v40, %v410_v40  ;;  %v403_v51 = vcombine.high %v401_v44, %v401_v44 }
  0xd8   :  { %v417_v53 = vrot.slane %v401_v44, %v393_v33 }
  0xd9   :  { %v232_v46 = vpop.f32.mrf.mxu1  ;;  %v443_v47 = vrot.slane %v424_v42, %v1579_v36  ;;  %v434_v49 = vcombine.high %v424_v42, %v424_v42  ;;  %v447_v52 = vrot.slane %v432_v45, %v1579_v36  ;;  %v431_v59 = vrot.slane %v403_v51, %v393_v33 }
  0xda   :  { %v476_v48 = vmul.f32 %v439_v43, %v232_v46  ;;  %v455_v60 = vrot.slane %v417_v53, %v1579_v36  ;;  %v433_v61 = vcombine.high %v417_v53, %v417_v53 }
  0xdb   :  { %v1260_v50 = vpop.f32.mrf.mxu1  ;;  %v477_v55 = vmul.f32 %v1257_v41, %v443_v47  ;;  %v451_v56 = vrot.slane %v434_v49, %v1579_v36  ;;  %v459_v2 = vrot.slane %v431_v59, %v1579_v36  ;;  %v435_v4 = vcombine.high %v431_v59, %v431_v59 }
  0xdc   :  { %716 = vrot.lane.b32.xlu0 %v476_v48, %s1382_s1  ;;  %v463_v5 = vrot.slane %v433_v61, %v1579_v36  ;;  %v485_v11 = vsel %vm484_vm3, %v476_v48, 0.0 }
  0xdd   :  { %v242_v54 = vpop.f32.mrf.mxu1  ;;  %v479_v63 = vmul.f32 %v1260_v50, %v451_v56  ;;  %v467_v9 = vrot.slane %v435_v4, %v1579_v36  ;;  %v488_v12 = vsel %vm484_vm3, %v477_v55, 0.0  ;;  %v527_v50 = vand.u32 127, %v391_v30 }
  0xde   :  { %v478_v57 = vmul.f32 %v447_v52, %v242_v54 }
  0xdf   :  { %v1263_v58 = vpop.f32.mrf.mxu1  ;;  %v494_v14 = vsel %vm484_vm3, %v479_v63, 0.0 }
  0xe0   :  { %720 = vrot.lane.b32.xlu1 %v478_v57, %s1382_s1  ;;  %718 = vrot.lane.b32.xlu0 %v477_v55, %s1382_s1  ;;  %v481_v7 = vmul.f32 %v1263_v58, %v459_v2  ;;  %v491_v13 = vsel %vm484_vm3, %v478_v57, 0.0  ;;  %v1607_v55 = vsub.s32 %v527_v50, %v1575_v32 }
  0xe1   :  { %v252_v62 = vpop.f32.mrf.mxu1 }
  0xe2   :  { %v480_v0 = vmul.f32 %v455_v60, %v252_v62  ;;  %v500_v16 = vsel %vm484_vm3, %v481_v7, 0.0 }
  0xe3   :  { %v1266_v1 = vpop.f32.mrf.mxu1 }
  0xe4   :  { %722 = vrot.lane.b32.xlu1 %v479_v63, %s1382_s1  ;;  %724 = vrot.lane.b32.xlu0 %v480_v0, %s1382_s1  ;;  %v483_v10 = vmul.f32 %v1266_v1, %v467_v9  ;;  %v497_v15 = vsel %vm484_vm3, %v480_v0, 0.0 }
  0xe5   :  { %v262_v6 = vpop.f32.mrf.mxu1 }
  0xe6   :  { %v482_v8 = vmul.f32 %v463_v5, %v262_v6  ;;  %v506_v19 = vsel %vm484_vm3, %v483_v10, 0.0 }
  0xe8   :  { %728 = vrot.lane.b32.xlu0 %v482_v8, %s1382_s1  ;;  %726 = vrot.lane.b32.xlu1 %v481_v7, %s1382_s1  ;;  %v503_v18 = vsel %vm484_vm3, %v482_v8, 0.0  ;;  %v48_v8 = vld [vmem:[%s1827_s2] sm:$0xff] }
  0xe9   :  { %vm517_vm11 = vcmp.gt.f32.partialorder %v48_v8, 0.5 }
  0xec   :  { %730 = vrot.lane.b32.xlu1 %v483_v10, %s1382_s1 }
 0x107   :  { %486 = vadd.xlane.f32.xlu0 %v485_v11 }
 0x110   :  { %489 = vadd.xlane.f32.xlu1 %v488_v12 }
 0x114   :  { %492 = vadd.xlane.f32.xlu1 %v491_v13 }
 0x118   :  { %495 = vadd.xlane.f32.xlu1 %v494_v14 }
 0x11c   :  { %498 = vadd.xlane.f32.xlu1 %v497_v15 }
 0x120   :  { %501 = vadd.xlane.f32.xlu1 %v500_v16 }
 0x124   :  { %504 = vadd.xlane.f32.xlu1 %v503_v18 }
 0x128   :  { %507 = vadd.xlane.f32.xlu1 %v506_v19 }
 0x14e   :  { %v717_v20 = vpop.permute.xlu0 %716 }
 0x14f   :  { %v740_v28 = vsel %vm484_vm3, %v717_v20, 0.0 }
 0x150   :  { %741 = vadd.xlane.f32.xlu0 %v740_v28 }
 0x152   :  { %v721_v29 = vpop.permute.xlu1 %720  ;;  %v719_v31 = vpop.permute.xlu0 %718 }
 0x153   :  { %v743_v33 = vsel %vm484_vm3, %v719_v31, 0.0  ;;  %v746_v35 = vsel %vm484_vm3, %v721_v29, 0.0 }
 0x154   :  { %744 = vadd.xlane.f32.xlu0 %v743_v33 }
 0x156   :  { %v723_v34 = vpop.permute.xlu1 %722  ;;  %v725_v39 = vpop.permute.xlu0 %724 }
 0x157   :  { %v749_v37 = vsel %vm484_vm3, %v723_v34, 0.0  ;;  %v752_v41 = vsel %vm484_vm3, %v725_v39, 0.0 }
 0x158   :  { %747 = vadd.xlane.f32.xlu0 %v746_v35 }
 0x15a   :  { %v727_v38 = vpop.permute.xlu1 %726  ;;  %v729_v42 = vpop.permute.xlu0 %728 }
 0x15b   :  { %v755_v40 = vsel %vm484_vm3, %v727_v38, 0.0  ;;  %v758_v43 = vsel %vm484_vm3, %v729_v42, 0.0 }
 0x15c   :  { %750 = vadd.xlane.f32.xlu0 %v749_v37 }
 0x15e   :  { %v731_v44 = vpop.permute.xlu1 %730 }
 0x15f   :  { %v761_v45 = vsel %vm484_vm3, %v731_v44, 0.0 }
 0x160   :  { %756 = vadd.xlane.f32.xlu0 %v755_v40 }
 0x164   :  { %753 = vadd.xlane.f32.xlu0 %v752_v41 }
 0x168   :  { %759 = vadd.xlane.f32.xlu0 %v758_v43 }
 0x16c   :  { %762 = vadd.xlane.f32.xlu0 %v761_v45 }
 0x190   :  { %v487_v51 = vpop.xlane.xlu0 %486 }
 0x191   :  { %v509_v56 = vmul.f32 0.17677669, %v487_v51 }
 0x193   :  { %v531_v63 = vrot.slane %v509_v56, %v1607_v55 }
 0x199   :  { %v490_v46 = vpop.xlane.xlu1 %489 }
 0x19a   :  { %v510_v52 = vmul.f32 0.17677669, %v490_v46 }
 0x19c   :  { %v535_v59 = vrot.slane %v510_v52, %v1607_v55 }
 0x19d   :  { %v493_v47 = vpop.xlane.xlu1 %492 }
 0x19e   :  { %v511_v53 = vmul.f32 0.17677669, %v493_v47  ;;  %v561_v2 = vsel %vm560_vm4, %v535_v59, %v531_v63  ;;  %v280_v63 = vld [vmem:[%s1830_s5 + $0x48] sm:$0xff] }
 0x19f   :  { %1267 = vmatprep.subr.mxu0 %v280_v63 }
 0x1a0   :  { %v539_v61 = vrot.slane %v511_v53, %v1607_v55  ;;  %1268 = vmatpush3.msra.mxu0 %v280_v63 }
 0x1a1   :  { %v496_v48 = vpop.xlane.xlu1 %495 }
 0x1a2   :  { %v512_v57 = vmul.f32 0.17677669, %v496_v48  ;;  %v563_v5 = vsel %vm562_vm5, %v539_v61, %v561_v2  ;;  %v275_v2 = vld [vmem:[%s1830_s5 + $0x20] sm:$0xff] }
 0x1a4   :  { %v543_v30 = vrot.slane %v512_v57, %v1607_v55 }
 0x1a5   :  { %v499_v49 = vpop.xlane.xlu1 %498 }
 0x1a6   :  { %v513_v58 = vmul.f32 0.17677669, %v499_v49  ;;  %v565_v9 = vsel %vm564_vm6, %v543_v30, %v563_v5  ;;  %v279_v30 = vld [vmem:[%s1830_s5 + $0x40] sm:$0xff]  ;;  %v273_v5 = vld [vmem:[%s1830_s5 + $0x10] sm:$0xff] }
 0x1a7   :  { %1269 = vmatprep.subr.mxu0 %v279_v30 }
 0x1a8   :  { %v547_v1 = vrot.slane %v513_v58, %v1607_v55  ;;  %1270 = vmatpush3.msra.mxu0 %v279_v30 }
 0x1a9   :  { %v502_v54 = vpop.xlane.xlu1 %501 }
 0x1aa   :  { %v514_v60 = vmul.f32 0.17677669, %v502_v54  ;;  %v567_v11 = vsel %vm566_vm7, %v547_v1, %v565_v9  ;;  %v276_v1 = vld [vmem:[%s1830_s5 + $0x28] sm:$0xff] }
 0x1ac   :  { %v551_v4 = vrot.slane %v514_v60, %v1607_v55 }
 0x1ad   :  { %v505_v62 = vpop.xlane.xlu1 %504 }
 0x1ae   :  { %v515_v0 = vmul.f32 0.17677669, %v505_v62  ;;  %v569_v13 = vsel %vm568_vm8, %v551_v4, %v567_v11  ;;  %v274_v4 = vld [vmem:[%s1830_s5 + $0x18] sm:$0xff] }
 0x1b0   :  { %v555_v6 = vrot.slane %v515_v0, %v1607_v55  ;;  %v277_v0 = vld [vmem:[%s1830_s5 + $0x30] sm:$0xff] }
 0x1b1   :  { %v508_v7 = vpop.xlane.xlu1 %507 }
 0x1b2   :  { %v516_v10 = vmul.f32 0.17677669, %v508_v7  ;;  %v571_v14 = vsel %vm570_vm9, %v555_v6, %v569_v13  ;;  %v272_v6 = vld [vmem:[%s1830_s5 + $0x8] sm:$0xff]  ;;  %v271_v7 = vld [vmem:[%s1830_s5] sm:$0xff] }
 0x1b4   :  { %v559_v12 = vrot.slane %v516_v10, %v1607_v55 }
 0x1b6   :  { %v573_v15 = vsel %vm572_vm10, %v559_v12, %v571_v14 }
 0x1b7   :  { %v1628_v16 = vsel %vm517_vm11, %v573_v15, -1e+10 }
 0x1b8   :  { %v577_v18 = vsel %vm576_vm12, %v1628_v16, -inf }
 0x1b9   :  { %578 = vmax.xlane.f32.xlu1 %v577_v18  ;;  %v604_v18 = vsub.s32 2, %v1575_v32 }
 0x1d9   :  { %v742_v19 = vpop.xlane.xlu0 %741 }
 0x1da   :  { %v764_v35 = vmul.f32 0.17677669, %v742_v19 }
 0x1dc   :  { %v783_v42 = vrot.slane %v764_v35, %v1607_v55  ;;  %v632_v35 = vsub.s32 6, %v1575_v32 }
 0x1dd   :  { %v745_v20 = vpop.xlane.xlu0 %744 }
 0x1de   :  { %v765_v33 = vmul.f32 0.17677669, %v745_v20  ;;  %v611_v20 = vsub.s32 3, %v1575_v32 }
 0x1e0   :  { %v787_v39 = vrot.slane %v765_v33, %v1607_v55  ;;  %v625_v33 = vsub.s32 5, %v1575_v32 }
 0x1e1   :  { %v748_v28 = vpop.xlane.xlu0 %747 }
 0x1e2   :  { %v766_v34 = vmul.f32 0.17677669, %v748_v28  ;;  %v812_v46 = vsel %vm560_vm4, %v787_v39, %v783_v42 }
 0x1e4   :  { %v791_v41 = vrot.slane %v766_v34, %v1607_v55 }
 0x1e5   :  { %v751_v29 = vpop.xlane.xlu0 %750 }
 0x1e6   :  { %v767_v37 = vmul.f32 0.17677669, %v751_v29  ;;  %v813_v49 = vsel %vm562_vm5, %v791_v41, %v812_v46  ;;  %v618_v29 = vsub.s32 4, %v1575_v32 }
 0x1e8   :  { %v795_v43 = vrot.slane %v767_v37, %v1607_v55 }
 0x1e9   :  { %v757_v31 = vpop.xlane.xlu0 %756 }
 0x1ea   :  { %v769_v47 = vmul.f32 0.17677669, %v757_v31  ;;  %v814_v50 = vsel %vm564_vm6, %v795_v43, %v813_v49  ;;  %v998_v49 = vld [vmem:[%s1831_s6 + $0x28] sm:$0xff] }
 0x1ec   :  { %v803_v54 = vrot.slane %v769_v47, %v1607_v55  ;;  %v1000_v47 = vld [vmem:[%s1831_s6 + $0x38] sm:$0xff] }
 0x1ed   :  { %v754_v38 = vpop.xlane.xlu0 %753  ;;  %1300 = vmatpush3.msra.mxu1 %v1000_v47 }
 0x1ee   :  { %v768_v40 = vmul.f32 0.17677669, %v754_v38  ;;  %v639_v38 = vsub.s32 7, %v1575_v32  ;;  %1301 = vmatprep.subr.mxu1 %v1379_v3 }
 0x1f0   :  { %v799_v44 = vrot.slane %v768_v40, %v1607_v55 }
 0x1f1   :  { %v760_v45 = vpop.xlane.xlu0 %759 }
 0x1f2   :  { %v770_v48 = vmul.f32 0.17677669, %v760_v45  ;;  %v815_v51 = vsel %vm566_vm7, %v799_v44, %v814_v50 }
 0x1f3   :  { %v816_v58 = vsel %vm568_vm8, %v803_v54, %v815_v51  ;;  %v997_v51 = vld [vmem:[%s1831_s6 + $0x20] sm:$0xff]  ;;  %v995_v54 = vld [vmem:[%s1831_s6 + $0x10] sm:$0xff] }
 0x1f4   :  { %v807_v52 = vrot.slane %v770_v48, %v1607_v55 }
 0x1f5   :  { %v763_v53 = vpop.xlane.xlu0 %762 }
 0x1f6   :  { %v771_v56 = vmul.f32 0.17677669, %v763_v53  ;;  %v817_v59 = vsel %vm570_vm9, %v807_v52, %v816_v58  ;;  %v996_v52 = vld [vmem:[%s1831_s6 + $0x18] sm:$0xff] }
 0x1f8   :  { %v811_v57 = vrot.slane %v771_v56, %v1607_v55  ;;  %v278_v55 = vld [vmem:[%s1830_s5 + $0x38] sm:$0xff]  ;;  %v994_v56 = vld [vmem:[%s1831_s6 + $0x8] sm:$0xff] }
 0x1f9   :  { %1271 = vmatprep.subr.mxu0 %v278_v55 }
 0x1fa   :  { %v818_v60 = vsel %vm572_vm10, %v811_v57, %v817_v59  ;;  %1272 = vmatpush3.msra.mxu0 %v278_v55  ;;  %v993_v57 = vld [vmem:[%s1831_s6] sm:$0xff] }
 0x1fb   :  { %v820_v61 = vsel %vm517_vm11, %v818_v60, -1e+10  ;;  %1273 = vmatprep.subr.mxu0 %v277_v0 }
 0x1fc   :  { %v821_v62 = vsel %vm576_vm12, %v820_v61, -inf  ;;  %1274 = vmatpush3.msra.mxu0 %v277_v0 }
 0x1fd   :  { %822 = vmax.xlane.f32.xlu0 %v821_v62  ;;  %1275 = vmatprep.subr.mxu0 %v276_v1 }
 0x1fe   :  { %1276 = vmatpush3.msra.mxu0 %v276_v1 }
 0x1ff   :  { %1277 = vmatprep.subr.mxu0 %v275_v2 }
 0x200   :  { %1278 = vmatpush3.msra.mxu0 %v275_v2 }
 0x201   :  { %1279 = vmatprep.subr.mxu0 %v274_v4 }
 0x202   :  { %1280 = vmatpush3.msra.mxu0 %v274_v4 }
 0x203   :  { %1281 = vmatprep.subr.mxu0 %v273_v5 }
 0x204   :  { %1282 = vmatpush3.msra.mxu0 %v273_v5 }
 0x205   :  { %1283 = vmatprep.subr.mxu0 %v272_v6 }
 0x206   :  { %1284 = vmatpush3.msra.mxu0 %v272_v6 }
 0x207   :  { %1285 = vmatprep.subr.mxu0 %v271_v7 }
 0x208   :  { %1286 = vmatpush3.msra.mxu0 %v271_v7 }
 0x209   :  { %1288 = vmatmul.mubr.msk.f32.vlgmr.msra.gmra.mxu0 %vm141_vm1, %v1524_v21 }
 0x20a   :  { %1290 = vmatprep.mubr.msk.f32.mxu0 %vm141_vm1, %v1530_v22 }
 0x20d   :  { %1291 = vmatmul.mubr.msk.f32.gmra.mxu0 %vm141_vm1, %v1540_v23 }
 0x20e   :  { %1293 = vmatprep.mubr.msk.f32.mxu0 %vm141_vm1, %v1545_v24 }
 0x211   :  { %1294 = vmatmul.mubr.msk.f32.gmra.mxu0 %vm141_vm1, %v1554_v25 }
 0x212   :  { %1296 = vmatprep.mubr.msk.f32.mxu0 %vm141_vm1, %v1559_v26 }
 0x215   :  { %1297 = vmatmul.mubr.msk.f32.gmra.mxu0 %vm141_vm1, %v1568_v27  ;;  %v597_v27 = vsub.s32 1, %v1575_v32 }
 0x242   :  { %v579_v8 = vpop.xlane.xlu1 %578 }
 0x243   :  { %v580_v21 = vsub.f32 %v1628_v16, %v579_v8 }
 0x245   :  { %v581_v9 = vmul.f32 1.442695, %v580_v21 }
 0x247   :  { %1325 = vpow2.f32 %v581_v9 }
 0x254   :  { %v1326_v22 = vpop.eup %1325 }
 0x255   :  { %v583_v23 = vsel %vm576_vm12, %v1326_v22, 0.0 }
 0x256   :  { %584 = vadd.xlane.f32.xlu1 %v583_v23 }
 0x286   :  { %v823_v10 = vpop.xlane.xlu0 %822 }
 0x287   :  { %v824_v24 = vsub.f32 %v820_v61, %v823_v10 }
 0x289   :  { %v825_v11 = vmul.f32 1.442695, %v824_v24 }
 0x28b   :  { %1327 = vpow2.f32 %v825_v11 }
 0x298   :  { %v1328_v25 = vpop.eup %1327 }
 0x299   :  { %v827_v12 = vsel %vm576_vm12, %v1328_v25, 0.0 }
 0x29a   :  { %828 = vadd.xlane.f32.xlu0 %v827_v12 }
 0x2c9   :  { %v1289_v60 = vpop.f32.mrf.mxu0 }
 0x2cb   :  { %v347_v62 = vpop.f32.mrf.mxu0 }
 0x2cd   :  { %v1292_v55 = vpop.f32.mrf.mxu0 }
 0x2cf   :  { %v357_v2 = vpop.f32.mrf.mxu0 }
 0x2d1   :  { %v1757_v6 = vpop.f32.mrf.mxu0 }
 0x2df   :  { %v585_v26 = vpop.xlane.xlu1 %584 }
 0x2e0   :  { %1329 = vrcp.f32 %v585_v26 }
 0x2ed   :  { %v1330_v13 = vpop.eup %1329 }
 0x2ee   :  { %v1697_v14 = vmul.f32 %v1330_v13, %v1326_v22  ;;  %v367_v22 = vpop.f32.mrf.mxu0 }
 0x2f0   :  { %v598_v15 = vrot.slane %v1697_v14, %v597_v27  ;;  %v591_v16 = vrot.slane %v1697_v14, %v1579_v36  ;;  %v605_v19 = vrot.slane %v1697_v14, %v604_v18  ;;  %v612_v28 = vrot.slane %v1697_v14, %v611_v20  ;;  %v1760_v11 = vpop.f32.mrf.mxu0 }
 0x2f1   :  { %v619_v31 = vrot.slane %v1697_v14, %v618_v29  ;;  %v626_v34 = vrot.slane %v1697_v14, %v625_v33  ;;  %v633_v37 = vrot.slane %v1697_v14, %v632_v35  ;;  %v640_v39 = vrot.slane %v1697_v14, %v639_v38 }
 0x2f2   :  { %600 = vbcast.lane.b32.xlu0 %v598_v15, 256  ;;  %593 = vbcast.lane.b32.xlu1 %v591_v16, 256 }
 0x2f6   :  { %607 = vbcast.lane.b32.xlu0 %v605_v19, 256 }
 0x2fa   :  { %614 = vbcast.lane.b32.xlu0 %v612_v28, 256 }
 0x2fe   :  { %621 = vbcast.lane.b32.xlu0 %v619_v31, 256 }
 0x302   :  { %628 = vbcast.lane.b32.xlu0 %v626_v34, 256 }
 0x306   :  { %635 = vbcast.lane.b32.xlu0 %v633_v37, 256 }
 0x30a   :  { %642 = vbcast.lane.b32.xlu0 %v640_v39, 256 }
 0x323   :  { %v829_v40 = vpop.xlane.xlu0 %828 }
 0x324   :  { %1331 = vrcp.f32 %v829_v40 }
 0x331   :  { %v1332_v41 = vpop.eup %1331 }
 0x332   :  { %v1714_v42 = vmul.f32 %v1332_v41, %v1328_v25 }
 0x334   :  { %v835_v43 = vrot.slane %v1714_v42, %v1579_v36  ;;  %v842_v44 = vrot.slane %v1714_v42, %v597_v27  ;;  %v849_v45 = vrot.slane %v1714_v42, %v604_v18  ;;  %v856_v32 = vrot.slane %v1714_v42, %v611_v20  ;;  %v999_v36 = vld [vmem:[%s1831_s6 + $0x30] sm:$0xff]  ;;  %v1763_v18 = vpop.f32.mrf.mxu0 }
 0x335   :  { %v863_v46 = vrot.slane %v1714_v42, %v618_v29  ;;  %v870_v48 = vrot.slane %v1714_v42, %v625_v33  ;;  %1302 = vmatpush3.msra.mxu1 %v999_v36  ;;  %v877_v50 = vrot.slane %v1714_v42, %v632_v35  ;;  %v884_v53 = vrot.slane %v1714_v42, %v639_v38 }
 0x336   :  { %837 = vbcast.lane.b32.xlu1 %v835_v43, 256  ;;  %1303 = vmatprep.subr.mxu1 %v1379_v3 }
 0x337   :  { %1304 = vmatpush3.msra.mxu1 %v998_v49 }
 0x338   :  { %1305 = vmatprep.subr.mxu1 %v1379_v3 }
 0x339   :  { %1306 = vmatpush3.msra.mxu1 %v997_v51 }
 0x33a   :  { %844 = vbcast.lane.b32.xlu1 %v842_v44, 256  ;;  %1307 = vmatprep.subr.mxu1 %v1379_v3 }
 0x33b   :  { %1308 = vmatpush3.msra.mxu1 %v996_v52 }
 0x33c   :  { %1309 = vmatprep.subr.mxu1 %v1379_v3 }
 0x33d   :  { %1310 = vmatpush3.msra.mxu1 %v995_v54 }
 0x33e   :  { %851 = vbcast.lane.b32.xlu1 %v849_v45, 256  ;;  %1311 = vmatprep.subr.mxu1 %v1379_v3 }
 0x33f   :  { %1312 = vmatpush3.msra.mxu1 %v994_v56 }
 0x340   :  { %1313 = vmatprep.subr.mxu1 %v1379_v3 }
 0x341   :  { %1314 = vmatpush3.msra.mxu1 %v993_v57 }
 0x342   :  { %858 = vbcast.lane.b32.xlu1 %v856_v32, 256 }
 0x346   :  { %865 = vbcast.lane.b32.xlu1 %v863_v46, 256 }
 0x34a   :  { %872 = vbcast.lane.b32.xlu1 %v870_v48, 256 }
 0x34e   :  { %879 = vbcast.lane.b32.xlu1 %v877_v50, 256 }
 0x352   :  { %886 = vbcast.lane.b32.xlu1 %v884_v53, 256 }
 0x364   :  { %v601_v58 = vpop.permute.xlu0 %600  ;;  %v594_v30 = vpop.permute.xlu1 %593 }
 0x365   :  { %v645_v0 = vmul.f32 %v1289_v60, %v601_v58  ;;  %v644_v1 = vmul.f32 %v594_v30, %v347_v62 }
 0x367   :  { %v659_v5 = vsel %vm484_vm3, %v645_v0, 0.0  ;;  %v652_v7 = vsel %vm484_vm3, %v644_v1, 0.0 }
 0x368   :  { %v608_v59 = vpop.permute.xlu0 %607  ;;  %v660_v8 = vrot.slane %v659_v5, 4  ;;  %v653_v9 = vrot.slane %v652_v7, 4 }
 0x369   :  { %v646_v21 = vmul.f32 %v608_v59, %v357_v2 }
 0x36a   :  { %v661_v24 = vadd.f32 %v660_v8, %v659_v5  ;;  %v654_v12 = vadd.f32 %v653_v9, %v652_v7 }
 0x36b   :  { %v666_v25 = vsel %vm484_vm3, %v646_v21, 0.0 }
 0x36c   :  { %v615_v61 = vpop.permute.xlu0 %614  ;;  %v662_v15 = vrot.slane %v661_v24, 2  ;;  %v667_v16 = vrot.slane %v666_v25, 4  ;;  %v655_v33 = vrot.slane %v654_v12, 2 }
 0x36d   :  { %v647_v26 = vmul.f32 %v1292_v55, %v615_v61 }
 0x36e   :  { %v663_v41 = vadd.f32 %v662_v15, %v661_v24  ;;  %v668_v43 = vadd.f32 %v667_v16, %v666_v25  ;;  %v656_v36 = vadd.f32 %v655_v33, %v654_v12 }
 0x36f   :  { %v673_v34 = vsel %vm484_vm3, %v647_v26, 0.0 }
 0x370   :  { %v622_v63 = vpop.permute.xlu0 %621  ;;  %v674_v32 = vrot.slane %v673_v34, 4  ;;  %v664_v57 = vrot.slane %v663_v41, 1  ;;  %v669_v61 = vrot.slane %v668_v43, 2 }
 0x371   :  { %v648_v29 = vmul.f32 %v622_v63, %v367_v22 }
 0x372   :  { %v1778_v8 = vadd.f32 %v664_v57, %v663_v41 }
 0x373   :  { %v680_v46 = vsel %vm484_vm3, %v648_v29, 0.0 }
 0x374   :  { %v629_v4 = vpop.permute.xlu0 %628  ;;  %v681_v58 = vrot.slane %v680_v46, 4 }
 0x375   :  { %v649_v31 = vmul.f32 %v1757_v6, %v629_v4 }
 0x376   :  { %v682_v21 = vadd.f32 %v681_v58, %v680_v46 }
 0x377   :  { %v687_v47 = vsel %vm484_vm3, %v649_v31, 0.0 }
 0x378   :  { %v636_v23 = vpop.permute.xlu0 %635  ;;  %v688_v59 = vrot.slane %v687_v47, 4  ;;  %v683_v29 = vrot.slane %v682_v21, 2 }
 0x379   :  { %v650_v37 = vmul.f32 %v636_v23, %v1763_v18 }
 0x37a   :  { %v689_v9 = vadd.f32 %v688_v59, %v687_v47 }
 0x37b   :  { %v694_v51 = vsel %vm484_vm3, %v650_v37, 0.0 }
 0x37c   :  { %v643_v19 = vpop.permute.xlu0 %642  ;;  %v695_v30 = vrot.slane %v694_v51, 4  ;;  %v690_v31 = vrot.slane %v689_v9, 2 }
 0x37d   :  { %v651_v38 = vmul.f32 %v1760_v11, %v643_v19 }
 0x37e   :  { %v696_v12 = vadd.f32 %v695_v30, %v694_v51 }
 0x37f   :  { %v701_v52 = vsel %vm484_vm3, %v651_v38, 0.0 }
 0x3a8   :  { %v838_v3 = vpop.permute.xlu1 %837 }
 0x3a9   :  { %v888_v20 = vmul.f32 %v838_v3, %v347_v62  ;;  %v675_v62 = vadd.f32 %v674_v32, %v673_v34 }
 0x3ab   :  { %v897_v44 = vsel %vm896_vm13, %v888_v20, 0.0 }
 0x3ac   :  { %v845_v10 = vpop.permute.xlu1 %844  ;;  %v898_v53 = vrot.slane %v897_v44, 4 }
 0x3ad   :  { %v889_v27 = vmul.f32 %v1289_v60, %v845_v10  ;;  %v676_v10 = vrot.slane %v675_v62, 2 }
 0x3ae   :  { %v899_v4 = vadd.f32 %v898_v53, %v897_v44 }
 0x3af   :  { %v904_v35 = vsel %vm896_vm13, %v889_v27, 0.0 }
 0x3b0   :  { %v852_v13 = vpop.permute.xlu1 %851  ;;  %v905_v48 = vrot.slane %v904_v35, 4  ;;  %v900_v16 = vrot.slane %v899_v4, 2 }
 0x3b1   :  { %v890_v28 = vmul.f32 %v852_v13, %v357_v2  ;;  %v657_v2 = vrot.slane %v656_v36, 1 }
 0x3b2   :  { %v906_v63 = vadd.f32 %v905_v48, %v904_v35  ;;  %v677_v35 = vadd.f32 %v676_v10, %v675_v62  ;;  %v901_v44 = vadd.f32 %v900_v16, %v899_v4  ;;  %v684_v48 = vadd.f32 %v683_v29, %v682_v21 }
 0x3b3   :  { %v911_v39 = vsel %vm896_vm13, %v890_v28, 0.0  ;;  %v658_v15 = vadd.f32 %v657_v2, %v656_v36  ;;  %v691_v36 = vadd.f32 %v690_v31, %v689_v9 }
 0x3b4   :  { %v859_v40 = vpop.permute.xlu1 %858  ;;  %v912_v49 = vrot.slane %v911_v39, 4  ;;  %v907_v24 = vrot.slane %v906_v63, 2  ;;  %v902_v59 = vrot.slane %v901_v44, 1  ;;  %v685_v30 = vrot.slane %v684_v48, 1 }
 0x3b5   :  { %v891_v45 = vmul.f32 %v1292_v55, %v859_v40  ;;  %v702_v55 = vrot.slane %v701_v52, 4 }
 0x3b6   :  { %v913_v0 = vadd.f32 %v912_v49, %v911_v39  ;;  %v908_v37 = vadd.f32 %v907_v24, %v906_v63  ;;  %v697_v39 = vrot.slane %v696_v12, 2  ;;  %v903_v9 = vadd.f32 %v902_v59, %v901_v44 }
 0x3b7   :  { %v918_v50 = vsel %vm896_vm13, %v891_v45, 0.0  ;;  %v703_v26 = vadd.f32 %v702_v55, %v701_v52  ;;  %v692_v55 = vrot.slane %v691_v36, 1 }
 0x3b8   :  { %v919_v54 = vrot.slane %v918_v50, 4  ;;  %v866_v56 = vpop.permute.xlu1 %865  ;;  %v914_v27 = vrot.slane %v913_v0, 2  ;;  %v909_v51 = vrot.slane %v908_v37, 1 }
 0x3b9   :  { %v892_v60 = vmul.f32 %v866_v56, %v367_v22  ;;  %v670_v22 = vadd.f32 %v669_v61, %v668_v43  ;;  %v704_v40 = vrot.slane %v703_v26, 2 }
 0x3ba   :  { %v920_v5 = vadd.f32 %v919_v54, %v918_v50  ;;  %v915_v41 = vadd.f32 %v914_v27, %v913_v0  ;;  %v698_v54 = vadd.f32 %v697_v39, %v696_v12  ;;  %v686_v12 = vadd.f32 %v685_v30, %v684_v48 }
 0x3bb   :  { %v925_v1 = vsel %vm896_vm13, %v892_v60, 0.0  ;;  %v705_v56 = vadd.f32 %v704_v40, %v703_v26  ;;  %v693_v26 = vadd.f32 %v692_v55, %v691_v36 }
 0x3bc   :  { %v926_v7 = vrot.slane %v925_v1, 4  ;;  %v873_v3 = vpop.permute.xlu1 %872  ;;  %v921_v19 = vrot.slane %v920_v5, 2  ;;  %v916_v57 = vrot.slane %v915_v41, 1 }
 0x3bd   :  { %v893_v23 = vmul.f32 %v1757_v6, %v873_v3  ;;  %v671_v6 = vrot.slane %v670_v22, 1  ;;  %v706_v3 = vrot.slane %v705_v56, 1 }
 0x3be   :  { %v927_v25 = vadd.f32 %v926_v7, %v925_v1  ;;  %v922_v45 = vadd.f32 %v921_v19, %v920_v5  ;;  %v910_v1 = vadd.f32 %v909_v51, %v908_v37  ;;  %v699_v7 = vrot.slane %v698_v54, 1 }
 0x3bf   :  { %v932_v13 = vsel %vm896_vm13, %v893_v23, 0.0  ;;  %v672_v63 = vadd.f32 %v671_v6, %v670_v22  ;;  %v917_v21 = vadd.f32 %v916_v57, %v915_v41 }
 0x3c0   :  { %v933_v20 = vrot.slane %v932_v13, 4  ;;  %v880_v28 = vpop.permute.xlu1 %879  ;;  %v928_v33 = vrot.slane %v927_v25, 2  ;;  %v923_v60 = vrot.slane %v922_v45, 1  ;;  %v984_v27 = vsel %vm560_vm4, %v910_v1, %v903_v9 }
 0x3c1   :  { %v894_v34 = vmul.f32 %v880_v28, %v1763_v18  ;;  %v678_v18 = vrot.slane %v677_v35, 1  ;;  %v985_v28 = vsel %vm562_vm5, %v917_v21, %v984_v27 }
 0x3c2   :  { %v934_v38 = vadd.f32 %v933_v20, %v932_v13  ;;  %v929_v49 = vadd.f32 %v928_v33, %v927_v25  ;;  %v924_v23 = vadd.f32 %v923_v60, %v922_v45  ;;  %v968_v25 = vsel %vm560_vm4, %v1778_v8, %v658_v15  ;;  %v1158_v45 = vld [vmem:[%s1832_s7] ss:$0 sm:$0xff]  ;;  %s1384_s7 = smov [#allocation4]  }
 0x3c3   :  { %v939_v43 = vsel %vm896_vm13, %v894_v34, 0.0  ;;  %v679_v5 = vadd.f32 %v678_v18, %v677_v35  ;;  %v969_v19 = vsel %vm562_vm5, %v672_v63, %v968_v25  ;;  %v700_v20 = vadd.f32 %v699_v7, %v698_v54  ;;  %s1129_s22 = sshll.u32 %s1384_s7, 4  ;;  %s1130_s22 = int_to_ptr.vmem [resolvable:$true] %s1129_s22 }
 0x3c4   :  { %v935_v32 = vrot.slane %v934_v38, 2  ;;  %v940_v46 = vrot.slane %v939_v43, 4  ;;  %v887_v47 = vpop.permute.xlu1 %886  ;;  %v930_v0 = vrot.slane %v929_v49, 1  ;;  %v707_v33 = vadd.f32 %v706_v3, %v705_v56  ;;  %s1335_s23 = scalar_lea.vmem %s1130_s22, 128  ;;  %p1340_p1 = scmp.lt.s32.totalorder %s1130_s22, %s1130_s22 }
 0x3c5   :  { %v895_v50 = vmul.f32 %v1760_v11, %v887_v47  ;;  %v970_v31 = vsel %vm564_vm6, %v679_v5, %v969_v19  ;;  %v986_v34 = vsel %vm564_vm6, %v924_v23, %v985_v28  ;;  %p1336_p0 = scmp.ne.s32.totalorder %s1130_s22, %s1335_s23  ;;  %p1341_p2 = scmp.lt.s32.totalorder %s1335_s23, %s1335_s23 }
 0x3c6   :  { %v936_v52 = vadd.f32 %v935_v32, %v934_v38  ;;  %v941_v53 = vadd.f32 %v940_v46, %v939_v43  ;;  %v931_v22 = vadd.f32 %v930_v0, %v929_v49  ;;  %v971_v8 = vsel %vm566_vm7, %v686_v12, %v970_v31 }
 0x3c7   :  { %v946_v58 = vsel %vm896_vm13, %v895_v50, 0.0  ;;  %v972_v35 = vsel %vm568_vm8, %v693_v26, %v971_v8  ;;  %p1342_p3 = por %p1341_p2, %p1340_p1 }
 0x3c8   :  { %v942_v61 = vrot.slane %v941_v53, 2  ;;  %v947_v62 = vrot.slane %v946_v58, 4  ;;  %v937_v2 = vrot.slane %v936_v52, 1  ;;  %v987_v15 = vsel %vm566_vm7, %v931_v22, %v986_v34 }
 0x3c9   :  { %v973_v39 = vsel %vm570_vm9, %v700_v20, %v972_v35  ;;  %p1343_p4 = pnand %p1342_p3, %p1336_p0 }
 0x3ca   :  { %v943_v11 = vadd.f32 %v942_v61, %v941_v53  ;;  %v948_v4 = vadd.f32 %v947_v62, %v946_v58  ;;  %v938_v13 = vadd.f32 %v937_v2, %v936_v52  ;;  %v974_v41 = vsel %vm572_vm10, %v707_v33, %v973_v39 }
 0x3cc   :  { %v944_v10 = vrot.slane %v943_v11, 1  ;;  %v949_v24 = vrot.slane %v948_v4, 2  ;;  %v988_v37 = vsel %vm568_vm8, %v938_v13, %v987_v15 }
 0x3ce   :  { %v950_v16 = vadd.f32 %v949_v24, %v948_v4  ;;  %v945_v29 = vadd.f32 %v944_v10, %v943_v11 }
 0x3d0   :  { %v951_v6 = vrot.slane %v950_v16, 1  ;;  %v989_v40 = vsel %vm570_vm9, %v945_v29, %v988_v37 }
 0x3d2   :  { %v952_v38 = vadd.f32 %v951_v6, %v950_v16 }
 0x3d4   :  { %v990_v43 = vsel %vm572_vm10, %v952_v38, %v989_v40 }
 0x3d5   :  { %v992_v44 = vsel %vm484_vm3, %v974_v41, %v990_v43 }
 0x3d6   :  { %1316 = vmatmul.mubr.msk.f32.vlgmr.msra.gmra.mxu1 %vm57_vm0, %v992_v44 }
 0x496   :  { %v1077_v32 = vpop.f32.mrf.mxu1 }
 0x497   :  { %v1078_v46 = vadd.f32 %v1158_v45, %v1077_v32 }
 0x498   :  { %v1317_v47 = vpop.f32.mrf.mxu1 }
 0x499   :  { %v1081_v48 = vadd.f32 %v1078_v46, %v1504_v17 }
 0x49b   :  { %v1082_v36 = vsel %vm57_vm0, %v1081_v48, 0.0 }
 0x49c   :  { %1083 = vadd.xlane.f32.xlu0 %v1082_v36 }
 0x4b2   :  { %954 = vrot.lane.b32.xlu0 %v1714_v42, %s1383_s21 }
 0x525   :  { %v1084_v49 = vpop.xlane.xlu0 %1083 }
 0x526   :  { %v1086_v50 = vmul.f32 0.015625, %v1084_v49 }
 0x528   :  { %v1087_v18 = vsub.f32 %v1081_v48, %v1086_v50 }
 0x529   :  { %v955_v51 = vpop.permute.xlu0 %954 }
 0x52a   :  { %v957_v52 = vsel %vm576_vm12, %v1697_v14, %v955_v51  ;;  %v1088_v53 = vmul.f32 %v1087_v18, %v1087_v18 }
 0x52b   :  { %959 = vst.msk [vmem:[#allocation4] sm:$0xff] %vm958_vm14, %v957_v52 }
 0x52c   :  { %v1089_v54 = vsel %vm57_vm0, %v1088_v53, 0.0 }
 0x52d   :  { %1090 = vadd.xlane.f32.xlu1 %v1089_v54 }
 0x52e   :  { %1346 = shalt.err (!%p1343_p4)
}
 0x52f   :  { %1132 = dma.vmem_to_hbm [thread:$0]  %s1130_s22, 128, %s1836_s11, [#allocation5]   ;;  %v1160_v57 = vld [vmem:[%s1833_s8] ss:$0 sm:$0xff] }
 0x530   :  { %v1161_v59 = vld [vmem:[%s1834_s9] ss:$0 sm:$0xff]  ;;  %s1385_s29 = smov [#allocation2]  }
 0x531   :  { %s1119_s1 = sshll.u32 %s1385_s29, 4  ;;  %s1120_s1 = int_to_ptr.vmem [resolvable:$true] %s1119_s1 }
 0x532   :  { %s1355_s11 = scalar_lea.vmem %s1120_s1, 128  ;;  %p1360_p6 = scmp.lt.s32.totalorder %s1120_s1, %s1120_s1 }
 0x533   :  { %p1356_p5 = scmp.ne.s32.totalorder %s1120_s1, %s1355_s11  ;;  %p1361_p7 = scmp.lt.s32.totalorder %s1355_s11, %s1355_s11 }
 0x535   :  { %p1362_p8 = por %p1361_p7, %p1360_p6 }
 0x537   :  { %p1363_p9 = pnand %p1362_p8, %p1356_p5 }
 0x5b6   :  { %v1091_v17 = vpop.xlane.xlu1 %1090 }
 0x5b7   :  { %v1092_v14 = vmul.f32 0.015625, %v1091_v17 }
 0x5b9   :  { %v1093_v42 = vadd.f32 1e-05, %v1092_v14 }
 0x5bb   :  { %1333 = vrsqrt.f32 %v1093_v42 }
 0x5c8   :  { %v1334_v56 = vpop.eup %1333 }
 0x5c9   :  { %v1095_v58 = vmul.f32 %v1334_v56, %v1087_v18 }
 0x5cb   :  { %v1103_v60 = vmul.f32 %v1160_v57, %v1095_v58 }
 0x5cd   :  { %v1111_v61 = vadd.f32 %v1161_v59, %v1103_v60 }
 0x5cf   :  { %1112 = vst.msk [vmem:[#allocation2] sm:$0xff] %vm57_vm0, %v1111_v61 }
 0x5d0   :  { %1366 = shalt.err (!%p1363_p9)
}
 0x5d1   :  { %1122 = dma.vmem_to_hbm [thread:$0]  %s1120_s1, 128, %s1835_s10, [#allocation3]  }
 0x5d2   :  { %1375 = dma.done.wait [#allocation3], 128  }
 0x5d3   :  { %1376 = vsyncadd [#allocation3], 4294967168 }
 0x5d4   :  { %1377 = dma.done.wait [#allocation5], 128  }
 0x5d5   :  { %1378 = vsyncadd [#allocation5], 4294967168 }
 0x5d6   :  { %1139 = vsyncpa [#allocation3], 1 }
 0x5d7   :  { %1140 = vsyncpa [#allocation5], 1 }

</bundles_post_ra>
